<compile_context>
chip_gen: v7x
topology: tpu7x:2x2x1
jax: 0.10.0
libtpu: 0.0.40
codegen_flags: <defaults>
</compile_context>

<pallas_src>
import math
from functools import partial

import jax
import jax.numpy as jnp
from jax import lax
from jax.experimental import pallas as pl
from jax.experimental.pallas import tpu as pltpu


def _pinn_kernel(*refs, n_hidden, matmul_dtype):
    if n_hidden > 0:
        x_ref, w0_ref, b0_ref, wh_ref, bh_ref, wf_ref, bf_ref, o_ref = refs
    else:
        x_ref, w0_ref, b0_ref, wf_ref, bf_ref, o_ref = refs
        wh_ref = bh_ref = None

    def dot(a, b):
        if matmul_dtype is not None:
            a = a.astype(matmul_dtype)
            b = b.astype(matmul_dtype)
        return jnp.dot(a, b, preferred_element_type=jnp.float32)

    # init layer + tanh
    h = jnp.tanh(dot(x_ref[...], w0_ref[...]) + b0_ref[...])

    # hidden layers + tanh
    if n_hidden > 0:
        if n_hidden <= 4:
            # short: unroll at trace time
            for i in range(n_hidden):
                h = jnp.tanh(dot(h, wh_ref[i]) + bh_ref[i])
        else:
            # deep: real loop keeps weight-slice live ranges bounded
            def body(i, h):
                return jnp.tanh(dot(h, wh_ref[i]) + bh_ref[i])
            h = lax.fori_loop(0, n_hidden, body, h)

    # final layer, no activation (output lanes padded to a dense 128 multiple)
    o_ref[...] = (dot(h, wf_ref[...]) + bf_ref[...]).astype(o_ref.dtype)


def _block_diag(w, g):
    """(a, b) -> (g*a, g*b) block-diagonal with g copies of w."""
    if g == 1:
        return w
    a, b = w.shape
    out = jnp.zeros((g * a, g * b), w.dtype)
    for i in range(g):
        out = out.at[i * a:(i + 1) * a, i * b:(i + 1) * b].set(w)
    return out


def pinn_forward(x, params, *, tm=1024, matmul_dtype=None):
    """x: (N, 5) float32.  params: dict of stacked weights/biases."""
    w0, b0, wh, bh, wf, bf = (params["w0"], params["b0"], params["wh"],
                              params["bh"], params["wf"], params["bf"])
    N, D_in = x.shape
    H = w0.shape[1]
    n_hidden = wh.shape[0]
    D_out = wf.shape[1]

    # lane-packing factor: pack G batch rows into the 128-lane axis
    G = 128 // H if (H < 128 and 128 % H == 0) else 1

    # batch tile must be a multiple of 8*G (packed sublane tile of 8)
    step = 8 * G
    tm = max(step, (tm // step) * step)
    N_pad = -(-N // tm) * tm
    grid = (N_pad // tm,)
    tm_p = tm // G                              # packed rows per batch tile

    # ---- build packed (block-diagonal) weights once in the wrapper ----
    w0p = _block_diag(w0, G)                    # (G*D_in, G*H)
    b0p = jnp.tile(b0, (1, G))                  # (1, G*H)
    if n_hidden > 0:
        whp = jnp.stack([_block_diag(wh[i], G) for i in range(n_hidden)])
        bhp = jnp.tile(bh, (1, 1, G))           # (L-1, 1, G*H)
    # pad the final-layer output columns up to a dense 128-lane multiple
    out_lanes = max(128, -(-(G * D_out) // 128) * 128)
    wfp = _block_diag(wf, G)                    # (G*H, G*D_out)
    wfp = jnp.pad(wfp, ((0, 0), (0, out_lanes - G * D_out)))
    bfp = jnp.pad(jnp.tile(bf, (1, G)), ((0, 0), (0, out_lanes - G * D_out)))

    # pack the input: batch rows [G*j, G*j+G) concatenated along the lane axis
    x_pad = jnp.pad(x, ((0, N_pad - N), (0, 0)))
    x_p = x_pad.reshape(N_pad // G, G * D_in)

    full = lambda shape: pl.BlockSpec(shape, lambda i: (0,) * len(shape))
    in_specs = [
        pl.BlockSpec((tm_p, G * D_in), lambda i: (i, 0)),   # packed x
        full(w0p.shape), full(b0p.shape),
    ]
    args = [x_p, w0p, b0p]
    if n_hidden > 0:                            # guard: n_hidden == 0 is legal
        in_specs += [full(whp.shape), full(bhp.shape)]
        args += [whp, bhp]
    in_specs += [full(wfp.shape), full(bfp.shape)]
    args += [wfp, bfp]

    kernel = partial(_pinn_kernel, n_hidden=n_hidden, matmul_dtype=matmul_dtype)

    out_p = pl.pallas_call(
        kernel,
        out_shape=jax.ShapeDtypeStruct((N_pad // G, out_lanes), jnp.float32),
        grid_spec=pltpu.PrefetchScalarGridSpec(
            num_scalar_prefetch=0,
            grid=grid,
            in_specs=in_specs,
            out_specs=pl.BlockSpec((tm_p, out_lanes), lambda i: (i, 0)),
        ),
        compiler_params=pltpu.CompilerParams(
            dimension_semantics=("parallel",)),
    )(*args)

    # un-pack: slice real columns, restore (N, D_out)
    return out_p[:, :G * D_out].reshape(N_pad, D_out)[:N]


def init_params(key, nb_neurons, nb_layers):
    """Xavier-uniform weights, zero biases (matches the torch init scheme)."""
    def xavier(k, fan_in, fan_out):
        a = math.sqrt(6.0 / (fan_in + fan_out))
        return jax.random.uniform(k, (fan_in, fan_out), jnp.float32, -a, a)

    n_hidden = nb_layers - 1
    keys = jax.random.split(key, n_hidden + 2)
    w0 = xavier(keys[0], 5, nb_neurons)
    b0 = jnp.zeros((1, nb_neurons), jnp.float32)
    if n_hidden > 0:
        wh = jnp.stack([xavier(keys[1 + i], nb_neurons, nb_neurons)
                        for i in range(n_hidden)])
    else:
        wh = jnp.zeros((0, nb_neurons, nb_neurons), jnp.float32)
    bh = jnp.zeros((max(n_hidden, 0), 1, nb_neurons), jnp.float32)
    wf = xavier(keys[-1], nb_neurons, 3)
    bf = jnp.zeros((1, 3), jnp.float32)
    return dict(w0=w0, b0=b0, wh=wh, bh=bh, wf=wf, bf=bf)


def pinn_reference(x, params):
    """Pure-JAX reference of the same forward."""
    h = jnp.tanh(x @ params["w0"] + params["b0"])
    for i in range(params["wh"].shape[0]):
        h = jnp.tanh(h @ params["wh"][i] + params["bh"][i])
    return h @ params["wf"] + params["bf"]


if __name__ == "__main__":
    hyper_param = {"nb_neurons": 32, "nb_layers": 3}  # init + 2 hidden + final
    key = jax.random.PRNGKey(0)
    k_param, k_x = jax.random.split(key)

    params = init_params(k_param, hyper_param["nb_neurons"],
                         hyper_param["nb_layers"])
    x = jax.random.normal(k_x, (64, 5), jnp.float32)  # (batch, 5) inputs

    out = pinn_forward(x, params)
    out = jax.block_until_ready(out)

    ref = pinn_reference(x, params)
    assert out.shape == (64, 3)
    assert jnp.allclose(out, ref, atol=1e-5, rtol=1e-5), "mismatch vs reference"

    print("KERNEL_OK")
</pallas_src>

<mosaic_0001>
module attributes {stable_mosaic.version = 11 : i64} {
  func.func @_pinn_kernel(%arg0: i32, %arg1: memref<256x20xf32, #tpu.memory_space<vmem>>, %arg2: memref<20x128xf32, #tpu.memory_space<vmem>>, %arg3: memref<1x128xf32, #tpu.memory_space<vmem>>, %arg4: memref<2x128x128xf32, #tpu.memory_space<vmem>>, %arg5: memref<2x1x128xf32, #tpu.memory_space<vmem>>, %arg6: memref<128x128xf32, #tpu.memory_space<vmem>>, %arg7: memref<1x128xf32, #tpu.memory_space<vmem>>, %arg8: memref<256x128xf32, #tpu.memory_space<vmem>>) attributes {dimension_semantics = [#tpu.dimension_semantics<parallel>], iteration_bounds = array<i64: 1>, scalar_prefetch = 0 : i64, scratch_operands = 0 : i64, tpu.core_type = #tpu.core_type<tc>, window_params = [{transform_indices = @transform_0, window_bounds = array<i64: 256, 20>}, {pipeline_mode = #tpu.pipeline_mode<synchronous>, transform_indices = @transform_1, window_bounds = array<i64: 20, 128>}, {pipeline_mode = #tpu.pipeline_mode<synchronous>, transform_indices = @transform_2, window_bounds = array<i64: 1, 128>}, {pipeline_mode = #tpu.pipeline_mode<synchronous>, transform_indices = @transform_3, window_bounds = array<i64: 2, 128, 128>}, {pipeline_mode = #tpu.pipeline_mode<synchronous>, transform_indices = @transform_4, window_bounds = array<i64: 2, 1, 128>}, {pipeline_mode = #tpu.pipeline_mode<synchronous>, transform_indices = @transform_5, window_bounds = array<i64: 128, 128>}, {pipeline_mode = #tpu.pipeline_mode<synchronous>, transform_indices = @transform_6, window_bounds = array<i64: 1, 128>}, {transform_indices = @transform_7, window_bounds = array<i64: 256, 128>}]} {
    %c0 = arith.constant 0 : index
    %c0_0 = arith.constant 0 : index
    %0 = vector.load %arg1[%c0, %c0_0] : memref<256x20xf32, #tpu.memory_space<vmem>>, vector<256x20xf32>
    %c0_1 = arith.constant 0 : index
    %c0_2 = arith.constant 0 : index
    %1 = vector.load %arg2[%c0_1, %c0_2] : memref<20x128xf32, #tpu.memory_space<vmem>>, vector<20x128xf32>
    %cst = arith.constant dense<0.000000e+00> : vector<256x128xf32>
    %2 = tpu.matmul %0, %1, %cst {dimension_numbers = #tpu.dot_dimension_numbers<[1], [0], [0], [1], [0, 0, 1, 1], [], []>} : vector<256x20xf32>, vector<20x128xf32>, vector<256x128xf32> -> vector<256x128xf32>
    %c0_3 = arith.constant 0 : index
    %c0_4 = arith.constant 0 : index
    %3 = vector.load %arg3[%c0_3, %c0_4] : memref<1x128xf32, #tpu.memory_space<vmem>>, vector<1x128xf32>
    %4 = vector.broadcast %3 : vector<1x128xf32> to vector<256x128xf32>
    %5 = arith.addf %2, %4 : vector<256x128xf32>
    %6 = math.tanh %5 : vector<256x128xf32>
    %c0_5 = arith.constant 0 : index
    %c0_6 = arith.constant 0 : index
    %c0_7 = arith.constant 0 : index
    %7 = vector.load %arg4[%c0_5, %c0_6, %c0_7] : memref<2x128x128xf32, #tpu.memory_space<vmem>>, vector<1x128x128xf32>
    %8 = vector.shape_cast %7 : vector<1x128x128xf32> to vector<128x128xf32>
    %cst_8 = arith.constant dense<0.000000e+00> : vector<256x128xf32>
    %9 = tpu.matmul %6, %8, %cst_8 {dimension_numbers = #tpu.dot_dimension_numbers<[1], [0], [0], [1], [0, 0, 1, 1], [], []>} : vector<256x128xf32>, vector<128x128xf32>, vector<256x128xf32> -> vector<256x128xf32>
    %c0_9 = arith.constant 0 : index
    %c0_10 = arith.constant 0 : index
    %c0_11 = arith.constant 0 : index
    %10 = vector.load %arg5[%c0_9, %c0_10, %c0_11] : memref<2x1x128xf32, #tpu.memory_space<vmem>>, vector<1x1x128xf32>
    %11 = vector.shape_cast %10 : vector<1x1x128xf32> to vector<1x128xf32>
    %12 = vector.broadcast %11 : vector<1x128xf32> to vector<256x128xf32>
    %13 = arith.addf %9, %12 : vector<256x128xf32>
    %14 = math.tanh %13 : vector<256x128xf32>
    %c1 = arith.constant 1 : index
    %c0_12 = arith.constant 0 : index
    %c0_13 = arith.constant 0 : index
    %15 = vector.load %arg4[%c1, %c0_12, %c0_13] : memref<2x128x128xf32, #tpu.memory_space<vmem>>, vector<1x128x128xf32>
    %16 = vector.shape_cast %15 : vector<1x128x128xf32> to vector<128x128xf32>
    %cst_14 = arith.constant dense<0.000000e+00> : vector<256x128xf32>
    %17 = tpu.matmul %14, %16, %cst_14 {dimension_numbers = #tpu.dot_dimension_numbers<[1], [0], [0], [1], [0, 0, 1, 1], [], []>} : vector<256x128xf32>, vector<128x128xf32>, vector<256x128xf32> -> vector<256x128xf32>
    %c1_15 = arith.constant 1 : index
    %c0_16 = arith.constant 0 : index
    %c0_17 = arith.constant 0 : index
    %18 = vector.load %arg5[%c1_15, %c0_16, %c0_17] : memref<2x1x128xf32, #tpu.memory_space<vmem>>, vector<1x1x128xf32>
    %19 = vector.shape_cast %18 : vector<1x1x128xf32> to vector<1x128xf32>
    %20 = vector.broadcast %19 : vector<1x128xf32> to vector<256x128xf32>
    %21 = arith.addf %17, %20 : vector<256x128xf32>
    %22 = math.tanh %21 : vector<256x128xf32>
    %c0_18 = arith.constant 0 : index
    %c0_19 = arith.constant 0 : index
    %23 = vector.load %arg6[%c0_18, %c0_19] : memref<128x128xf32, #tpu.memory_space<vmem>>, vector<128x128xf32>
    %cst_20 = arith.constant dense<0.000000e+00> : vector<256x128xf32>
    %24 = tpu.matmul %22, %23, %cst_20 {dimension_numbers = #tpu.dot_dimension_numbers<[1], [0], [0], [1], [0, 0, 1, 1], [], []>} : vector<256x128xf32>, vector<128x128xf32>, vector<256x128xf32> -> vector<256x128xf32>
    %c0_21 = arith.constant 0 : index
    %c0_22 = arith.constant 0 : index
    %25 = vector.load %arg7[%c0_21, %c0_22] : memref<1x128xf32, #tpu.memory_space<vmem>>, vector<1x128xf32>
    %26 = vector.broadcast %25 : vector<1x128xf32> to vector<256x128xf32>
    %27 = arith.addf %24, %26 : vector<256x128xf32>
    %c0_23 = arith.constant 0 : index
    %c0_24 = arith.constant 0 : index
    %28 = vector.load %arg8[%c0_23, %c0_24] : memref<256x128xf32, #tpu.memory_space<vmem>>, vector<256x128xf32>
    tpu.vector_store %arg8[%c0_23, %c0_24], %27 {strides = array<i32>} : memref<256x128xf32, #tpu.memory_space<vmem>>, vector<256x128xf32>,
    return
  }
  func.func @transform_0(%arg0: i32) -> (i32, i32) {
    %c0_i32 = arith.constant 0 : i32
    %c0_i32_0 = arith.constant 0 : i32
    return %arg0, %c0_i32 : i32, i32
  }
  func.func @transform_1(%arg0: i32) -> (i32, i32) {
    %c0_i32 = arith.constant 0 : i32
    %c0_i32_0 = arith.constant 0 : i32
    %c0_i32_1 = arith.constant 0 : i32
    return %c0_i32, %c0_i32_0 : i32, i32
  }
  func.func @transform_2(%arg0: i32) -> (i32, i32) {
    %c0_i32 = arith.constant 0 : i32
    %c0_i32_0 = arith.constant 0 : i32
    %c0_i32_1 = arith.constant 0 : i32
    return %c0_i32, %c0_i32_0 : i32, i32
  }
  func.func @transform_3(%arg0: i32) -> (i32, i32, i32) {
    %c0_i32 = arith.constant 0 : i32
    %c0_i32_0 = arith.constant 0 : i32
    %c0_i32_1 = arith.constant 0 : i32
    %c0_i32_2 = arith.constant 0 : i32
    return %c0_i32, %c0_i32_0, %c0_i32_1 : i32, i32, i32
  }
  func.func @transform_4(%arg0: i32) -> (i32, i32, i32) {
    %c0_i32 = arith.constant 0 : i32
    %c0_i32_0 = arith.constant 0 : i32
    %c0_i32_1 = arith.constant 0 : i32
    %c0_i32_2 = arith.constant 0 : i32
    return %c0_i32, %c0_i32_0, %c0_i32_1 : i32, i32, i32
  }
  func.func @transform_5(%arg0: i32) -> (i32, i32) {
    %c0_i32 = arith.constant 0 : i32
    %c0_i32_0 = arith.constant 0 : i32
    %c0_i32_1 = arith.constant 0 : i32
    return %c0_i32, %c0_i32_0 : i32, i32
  }
  func.func @transform_6(%arg0: i32) -> (i32, i32) {
    %c0_i32 = arith.constant 0 : i32
    %c0_i32_0 = arith.constant 0 : i32
    %c0_i32_1 = arith.constant 0 : i32
    return %c0_i32, %c0_i32_0 : i32, i32
  }
  func.func @transform_7(%arg0: i32) -> (i32, i32) {
    %c0_i32 = arith.constant 0 : i32
    %c0_i32_0 = arith.constant 0 : i32
    return %arg0, %c0_i32 : i32, i32
  }
}

</mosaic_0001>

<bundles_post_ra>
// kernel: tpu_custom_call.1
= control target key start
LH: loop header
LB: loop body
LE: loop exit
PB: predicated region body
PF: predicated region fallthrough
CT: control target
= control target key end

     0   :  { %12 = vsyncpa [#allocation3], 0  ;;  %s2666_s0 = inlined_call_operand.vmem [shape: f32[256,20], index: 0, kind: input, shape index: {}]   ;;  %s2667_s1 = inlined_call_operand.vmem [shape: f32[20,128], index: 1, kind: input, shape index: {}]   ;;  %s2668_s2 = inlined_call_operand.vmem [shape: f32[1,128], index: 2, kind: input, shape index: {}]   ;;  %s2669_s3 = inlined_call_operand.vmem [shape: f32[2,128,128], index: 3, kind: input, shape index: {}]   ;;  %s2670_s4 = inlined_call_operand.vmem [shape: f32[2,1,128], index: 4, kind: input, shape index: {}]   ;;  %s2671_s5 = inlined_call_operand.hbm [shape: f32[128,128], index: 5, kind: input, shape index: {}]   ;;  %s2672_s6 = inlined_call_operand.vmem [shape: f32[1,128], index: 6, kind: input, shape index: {}]   ;;  %s2673_s7 = inlined_call_operand.hbm [shape: f32[256,128], index: 7, kind: output, shape index: {}]  }
   0x1   :  { %13 = vsyncpa [#allocation4], 0  ;;  %s2187_s24 = smov [#allocation2]   ;;  %s2139_s28 = scalar_lea.hbm %s2671_s5, 2048 }
   0x2   :  { %s29_s25 = sshll.u32 %s2187_s24, 4  ;;  %p2140_p0 = scmp.ne.s32.totalorder %s2671_s5, %s2139_s28  ;;  %s30_s25 = int_to_ptr.vmem [resolvable:$true] %s29_s25 }
   0x3   :  { %p2143_p1 = scmp.lt.u32.totalorder %s2139_s28, %s2671_s5 }
   0x5   :  { %p2145_p2 = pnand %p2143_p1, %p2140_p0 }
   0x7   :  { %2148 = shalt.err (!%p2145_p2)
}
   0x8   :  { %s2149_s10 = scalar_lea.vmem %s30_s25, 2048  ;;  %p2154_p4 = scmp.lt.s32.totalorder %s30_s25, %s30_s25 }
   0x9   :  { %p2150_p3 = scmp.ne.s32.totalorder %s30_s25, %s2149_s10  ;;  %p2155_p5 = scmp.lt.s32.totalorder %s2149_s10, %s2149_s10 }
   0xb   :  { %p2156_p6 = por %p2155_p5, %p2154_p4 }
   0xd   :  { %p2157_p7 = pnand %p2156_p6, %p2150_p3 }
   0xf   :  { %2160 = shalt.err (!%p2157_p7)
}
  0x10   :  { %s2188_s11 = smov 128   ;;  %s2189_s12 = smov 8  }
  0x11   :  { %35 = dma.hbm_to_vmem [thread:$0]  %s2671_s5, 2048, %s30_s25, [#allocation3], %s2188_s11, %s2188_s11, %s2189_s12  }
  0x12   :  { %2183 = dma.done.wait [#allocation3], 2048  }
  0x13   :  { %2184 = vsyncadd [#allocation3], 4294965248  ;;  %vm83_vm0 = vcmask 162816   ;;  %v73_v0 = vld [vmem:[%s2667_s1] sm:$0xff]  ;;  %v74_v1 = vld [vmem:[%s2667_s1 + $0x8] sm:$0xff]  ;;  %vm180_vm1 = vcmask 1043456  }
  0x14   :  { %v1827_v2 = vpack.c.bf16 %v74_v1, %v73_v0  ;;  %v41_v3 = vld [vmem:[%s2666_s0] sm:$0xff]  ;;  %v75_v4 = vld [vmem:[%s2667_s1 + $0x10] sm:$0xf]  ;;  %v42_v5 = vld [vmem:[%s2666_s0 + $0x8] sm:$0xff] }
  0x15   :  { %1539 = vmatprep.mubr.msk.f32.mxu0 %vm83_vm0, %v41_v3  ;;  %v43_v6 = vld [vmem:[%s2666_s0 + $0x10] sm:$0xff]  ;;  %v44_v7 = vld [vmem:[%s2666_s0 + $0x18] sm:$0xff]  ;;  %v45_v8 = vld [vmem:[%s2666_s0 + $0x20] sm:$0xff] }
  0x16   :  { %1828 = vmatprep.subr.bf16.mxu0 %v1827_v2  ;;  %v441_v9 = vld [vmem:[%s2669_s3] sm:$0xff]  ;;  %v442_v10 = vld [vmem:[%s2669_s3 + $0x8] sm:$0xff]  ;;  %v443_v11 = vld [vmem:[%s2669_s3 + $0x10] sm:$0xff] }
  0x17   :  { %1830 = vmatpush3.bf16.msra.mxu0 %v1827_v2  ;;  %v444_v12 = vld [vmem:[%s2669_s3 + $0x18] sm:$0xff]  ;;  %v1831_v13 = vpack.c.bf16 %v442_v10, %v441_v9  ;;  %v46_v15 = vld [vmem:[%s2666_s0 + $0x28] sm:$0xff]  ;;  %v445_v16 = vld [vmem:[%s2669_s3 + $0x20] sm:$0xff] }
  0x18   :  { %1537 = vmatprep.subr.msk.mxu0 %vm180_vm1, %v75_v4  ;;  %v1835_v14 = vpack.c.bf16 %v444_v12, %v443_v11  ;;  %v446_v17 = vld [vmem:[%s2669_s3 + $0x28] sm:$0xff]  ;;  %v47_v18 = vld [vmem:[%s2666_s0 + $0x30] sm:$0xff]  ;;  %v48_v20 = vld [vmem:[%s2666_s0 + $0x38] sm:$0xff] }
  0x19   :  { %1832 = vmatprep.subr.bf16.mxu1 %v1831_v13  ;;  %v1839_v19 = vpack.c.bf16 %v446_v17, %v445_v16  ;;  %v447_v21 = vld [vmem:[%s2669_s3 + $0x30] sm:$0xff]  ;;  %v448_v22 = vld [vmem:[%s2669_s3 + $0x38] sm:$0xff]  ;;  %v49_v23 = vld [vmem:[%s2666_s0 + $0x40] sm:$0xff] }
  0x1a   :  { %1834 = vmatpush3.bf16.msra.mxu1 %v1831_v13  ;;  %v1843_v24 = vpack.c.bf16 %v448_v22, %v447_v21  ;;  %v50_v25 = vld [vmem:[%s2666_s0 + $0x48] sm:$0xff]  ;;  %v51_v26 = vld [vmem:[%s2666_s0 + $0x50] sm:$0xff]  ;;  %v52_v27 = vld [vmem:[%s2666_s0 + $0x58] sm:$0xff] }
  0x1b   :  { %1538 = vmatpush3.msk.msra.mxu0 %vm180_vm1, %v75_v4  ;;  %1836 = vmatprep.subr.bf16.mxu1 %v1835_v14  ;;  %v53_v28 = vld [vmem:[%s2666_s0 + $0x60] sm:$0xff]  ;;  %v54_v29 = vld [vmem:[%s2666_s0 + $0x68] sm:$0xff]  ;;  %v55_v30 = vld [vmem:[%s2666_s0 + $0x70] sm:$0xff] }
  0x1c   :  { %1540 = vmatmul.mubr.msk.f32.vlgmr.msra.gmra.mrb[0].mxu0 %vm83_vm0, %v42_v5  ;;  %v56_v31 = vld [vmem:[%s2666_s0 + $0x78] sm:$0xff]  ;;  %v57_v32 = vld [vmem:[%s2666_s0 + $0x80] sm:$0xff]  ;;  %v58_v33 = vld [vmem:[%s2666_s0 + $0x88] sm:$0xff] }
  0x1d   :  { %1542 = vmatprep.mubr.msk.f32.mxu0 %vm83_vm0, %v43_v6  ;;  %v59_v34 = vld [vmem:[%s2666_s0 + $0x90] sm:$0xff]  ;;  %v60_v35 = vld [vmem:[%s2666_s0 + $0x98] sm:$0xff]  ;;  %v61_v36 = vld [vmem:[%s2666_s0 + $0xa0] sm:$0xff] }
  0x1e   :  { %1838 = vmatpush3.bf16.msra.mxu1 %v1835_v14  ;;  %v62_v37 = vld [vmem:[%s2666_s0 + $0xa8] sm:$0xff]  ;;  %v63_v38 = vld [vmem:[%s2666_s0 + $0xb0] sm:$0xff]  ;;  %v64_v39 = vld [vmem:[%s2666_s0 + $0xb8] sm:$0xff] }
  0x1f   :  { %1840 = vmatprep.subr.bf16.mxu1 %v1839_v19  ;;  %v65_v40 = vld [vmem:[%s2666_s0 + $0xc0] sm:$0xff]  ;;  %v66_v41 = vld [vmem:[%s2666_s0 + $0xc8] sm:$0xff]  ;;  %v67_v42 = vld [vmem:[%s2666_s0 + $0xd0] sm:$0xff] }
  0x20   :  { %1543 = vmatmul.mubr.msk.f32.gmra.mrb[2].mxu0 %vm83_vm0, %v44_v7  ;;  %v68_v43 = vld [vmem:[%s2666_s0 + $0xd8] sm:$0xff]  ;;  %v69_v44 = vld [vmem:[%s2666_s0 + $0xe0] sm:$0xff]  ;;  %v70_v45 = vld [vmem:[%s2666_s0 + $0xe8] sm:$0xff] }
  0x21   :  { %1545 = vmatprep.mubr.msk.f32.mxu0 %vm83_vm0, %v45_v8  ;;  %v71_v46 = vld [vmem:[%s2666_s0 + $0xf0] sm:$0xff]  ;;  %v72_v47 = vld [vmem:[%s2666_s0 + $0xf8] sm:$0xff]  ;;  %v449_v48 = vld [vmem:[%s2669_s3 + $0x40] sm:$0xff] }
  0x22   :  { %1842 = vmatpush3.bf16.msra.mxu1 %v1839_v19  ;;  %v450_v49 = vld [vmem:[%s2669_s3 + $0x48] sm:$0xff]  ;;  %v451_v51 = vld [vmem:[%s2669_s3 + $0x50] sm:$0xff]  ;;  %v452_v52 = vld [vmem:[%s2669_s3 + $0x58] sm:$0xff] }
  0x23   :  { %1844 = vmatprep.subr.bf16.mxu1 %v1843_v24  ;;  %v1847_v50 = vpack.c.bf16 %v450_v49, %v449_v48  ;;  %v1851_v53 = vpack.c.bf16 %v452_v52, %v451_v51  ;;  %v453_v54 = vld [vmem:[%s2669_s3 + $0x60] sm:$0xff]  ;;  %v454_v55 = vld [vmem:[%s2669_s3 + $0x68] sm:$0xff]  ;;  %v455_v57 = vld [vmem:[%s2669_s3 + $0x70] sm:$0xff] }
  0x24   :  { %1546 = vmatmul.mubr.msk.f32.gmra.mrb[4].mxu0 %vm83_vm0, %v46_v15  ;;  %v1855_v56 = vpack.c.bf16 %v454_v55, %v453_v54  ;;  %v456_v58 = vld [vmem:[%s2669_s3 + $0x78] sm:$0xff]  ;;  %v1335_v60 = vld [vmem:[%s2669_s3 + $0x80] sm:$0xff]  ;;  %v1336_v61 = vld [vmem:[%s2669_s3 + $0x88] sm:$0xff] }
  0x25   :  { %1548 = vmatprep.mubr.msk.f32.mxu0 %vm83_vm0, %v47_v18  ;;  %v1859_v59 = vpack.c.bf16 %v456_v58, %v455_v57  ;;  %v1337_v62 = vld [vmem:[%s2669_s3 + $0x90] sm:$0xff]  ;;  %v1863_v63 = vpack.c.bf16 %v1336_v61, %v1335_v60  ;;  %v1338_v0 = vld [vmem:[%s2669_s3 + $0x98] sm:$0xff]  ;;  %v1339_v2 = vld [vmem:[%s2669_s3 + $0xa0] sm:$0xff] }
  0x26   :  { %1846 = vmatpush3.bf16.msra.mxu1 %v1843_v24  ;;  %v1867_v1 = vpack.c.bf16 %v1338_v0, %v1337_v62  ;;  %v1340_v3 = vld [vmem:[%s2669_s3 + $0xa8] sm:$0xff]  ;;  %v1341_v5 = vld [vmem:[%s2669_s3 + $0xb0] sm:$0xff]  ;;  %v1342_v6 = vld [vmem:[%s2669_s3 + $0xb8] sm:$0xff] }
  0x27   :  { %1848 = vmatprep.subr.bf16.mxu1 %v1847_v50  ;;  %1864 = vmatprep.subr.bf16.mxu0 %v1863_v63  ;;  %v1871_v4 = vpack.c.bf16 %v1340_v3, %v1339_v2  ;;  %v1875_v7 = vpack.c.bf16 %v1342_v6, %v1341_v5  ;;  %v1343_v8 = vld [vmem:[%s2669_s3 + $0xc0] sm:$0xff]  ;;  %v1344_v9 = vld [vmem:[%s2669_s3 + $0xc8] sm:$0xff]  ;;  %v1345_v11 = vld [vmem:[%s2669_s3 + $0xd0] sm:$0xff] }
  0x28   :  { %1549 = vmatmul.mubr.msk.f32.gmra.mrb[6].mxu0 %vm83_vm0, %v48_v20  ;;  %v1879_v10 = vpack.c.bf16 %v1344_v9, %v1343_v8  ;;  %v1346_v12 = vld [vmem:[%s2669_s3 + $0xd8] sm:$0xff]  ;;  %v1347_v14 = vld [vmem:[%s2669_s3 + $0xe0] sm:$0xff]  ;;  %v1348_v15 = vld [vmem:[%s2669_s3 + $0xe8] sm:$0xff] }
  0x29   :  { %1551 = vmatprep.mubr.msk.f32.mxu0 %vm83_vm0, %v49_v23  ;;  %1866 = vmatpush3.bf16.msra.mxu0 %v1863_v63  ;;  %v1883_v13 = vpack.c.bf16 %v1346_v12, %v1345_v11  ;;  %v1887_v16 = vpack.c.bf16 %v1348_v15, %v1347_v14  ;;  %v2476_v17 = vld [vmem:[%s2668_s2] ss:$0 sm:$0xff] }
  0x2a   :  { %1850 = vmatpush3.bf16.msra.mxu1 %v1847_v50  ;;  %1868 = vmatprep.subr.bf16.mxu0 %v1867_v1 }
  0x2b   :  { %1852 = vmatprep.subr.bf16.mxu1 %v1851_v53 }
  0x2c   :  { %1552 = vmatmul.mubr.msk.f32.gmra.mrb[8].mxu0 %vm83_vm0, %v50_v25 }
  0x2d   :  { %1554 = vmatprep.mubr.msk.f32.mxu0 %vm83_vm0, %v51_v26  ;;  %1870 = vmatpush3.bf16.msra.mxu0 %v1867_v1 }
  0x2e   :  { %1854 = vmatpush3.bf16.msra.mxu1 %v1851_v53  ;;  %1872 = vmatprep.subr.bf16.mxu0 %v1871_v4 }
  0x2f   :  { %1856 = vmatprep.subr.bf16.mxu1 %v1855_v56 }
  0x30   :  { %1555 = vmatmul.mubr.msk.f32.gmra.mrb[10].mxu0 %vm83_vm0, %v52_v27 }
  0x31   :  { %1557 = vmatprep.mubr.msk.f32.mxu0 %vm83_vm0, %v53_v28  ;;  %1874 = vmatpush3.bf16.msra.mxu0 %v1871_v4 }
  0x32   :  { %1858 = vmatpush3.bf16.msra.mxu1 %v1855_v56  ;;  %1876 = vmatprep.subr.bf16.mxu0 %v1875_v7 }
  0x33   :  { %1860 = vmatprep.subr.bf16.mxu1 %v1859_v59 }
  0x34   :  { %1558 = vmatmul.mubr.msk.f32.gmra.mrb[12].mxu0 %vm83_vm0, %v54_v29 }
  0x35   :  { %1560 = vmatprep.mubr.msk.f32.mxu0 %vm83_vm0, %v55_v30  ;;  %1878 = vmatpush3.bf16.msra.mxu0 %v1875_v7 }
  0x36   :  { %1862 = vmatpush3.bf16.msra.mxu1 %v1859_v59  ;;  %1880 = vmatprep.subr.bf16.mxu0 %v1879_v10 }
  0x38   :  { %1561 = vmatmul.mubr.msk.f32.gmra.mrb[14].mxu0 %vm83_vm0, %v56_v31 }
  0x39   :  { %1563 = vmatprep.mubr.msk.f32.mxu0 %vm83_vm0, %v57_v32  ;;  %1882 = vmatpush3.bf16.msra.mxu0 %v1879_v10 }
  0x3a   :  { %1884 = vmatprep.subr.bf16.mxu0 %v1883_v13 }
  0x3c   :  { %1564 = vmatmul.mubr.msk.f32.gmra.mrb[16].mxu0 %vm83_vm0, %v58_v33 }
  0x3d   :  { %1566 = vmatprep.mubr.msk.f32.mxu0 %vm83_vm0, %v59_v34  ;;  %1886 = vmatpush3.bf16.msra.mxu0 %v1883_v13 }
  0x3e   :  { %1888 = vmatprep.subr.bf16.mxu0 %v1887_v16 }
  0x40   :  { %1567 = vmatmul.mubr.msk.f32.gmra.mrb[18].mxu0 %vm83_vm0, %v60_v35 }
  0x41   :  { %1569 = vmatprep.mubr.msk.f32.mxu0 %vm83_vm0, %v61_v36  ;;  %1890 = vmatpush3.bf16.msra.mxu0 %v1887_v16 }
  0x44   :  { %1570 = vmatmul.mubr.msk.f32.gmra.mrb[20].mxu0 %vm83_vm0, %v62_v37 }
  0x45   :  { %1572 = vmatprep.mubr.msk.f32.mxu0 %vm83_vm0, %v63_v38 }
  0x48   :  { %1573 = vmatmul.mubr.msk.f32.gmra.mrb[22].mxu0 %vm83_vm0, %v64_v39 }
  0x49   :  { %1575 = vmatprep.mubr.msk.f32.mxu0 %vm83_vm0, %v65_v40 }
  0x4c   :  { %1576 = vmatmul.mubr.msk.f32.gmra.mrb[24].mxu0 %vm83_vm0, %v66_v41 }
  0x4d   :  { %1578 = vmatprep.mubr.msk.f32.mxu0 %vm83_vm0, %v67_v42 }
  0x50   :  { %1579 = vmatmul.mubr.msk.f32.gmra.mrb[26].mxu0 %vm83_vm0, %v68_v43 }
  0x51   :  { %1581 = vmatprep.mubr.msk.f32.mxu0 %vm83_vm0, %v69_v44 }
  0x54   :  { %1582 = vmatmul.mubr.msk.f32.gmra.mrb[28].mxu0 %vm83_vm0, %v70_v45 }
  0x55   :  { %1584 = vmatprep.mubr.msk.f32.mxu0 %vm83_vm0, %v71_v46 }
  0x58   :  { %1585 = vmatmul.mubr.msk.f32.gmra.mrb[30].mxu0 %vm83_vm0, %v72_v47 }
  0xef   :  { %v1541_v18 = vpop.f32.mrb[0].mxu0 }
  0xf0   :  { %v256_v19 = vadd.f32 %v1541_v18, %v2476_v17  ;;  %v250_v20 = vpop.f32.mrb[1].mxu0 }
  0xf1   :  { %v251_v21 = vadd.f32 %v2476_v17, %v250_v20 }
  0xf3   :  { %1947 = vtanh.f32 %v251_v21  ;;  %v1544_v22 = vpop.f32.mrb[2].mxu0 }
  0xf4   :  { %1949 = vtanh.f32 %v256_v19  ;;  %v266_v23 = vadd.f32 %v1544_v22, %v2476_v17  ;;  %v260_v24 = vpop.f32.mrb[3].mxu0 }
  0xf5   :  { %v261_v25 = vadd.f32 %v2476_v17, %v260_v24 }
  0xf7   :  { %1951 = vtanh.f32 %v261_v25  ;;  %v1547_v26 = vpop.f32.mrb[4].mxu0 }
  0xf8   :  { %1953 = vtanh.f32 %v266_v23  ;;  %v276_v27 = vadd.f32 %v1547_v26, %v2476_v17  ;;  %v270_v28 = vpop.f32.mrb[5].mxu0 }
  0xf9   :  { %v271_v29 = vadd.f32 %v2476_v17, %v270_v28 }
  0xfb   :  { %1955 = vtanh.f32 %v271_v29  ;;  %v1550_v30 = vpop.f32.mrb[6].mxu0 }
  0xfc   :  { %1957 = vtanh.f32 %v276_v27  ;;  %v286_v31 = vadd.f32 %v1550_v30, %v2476_v17  ;;  %v280_v32 = vpop.f32.mrb[7].mxu0 }
  0xfd   :  { %v1948_v33 = vpop.eup %1947  ;;  %v281_v34 = vadd.f32 %v2476_v17, %v280_v32 }
  0xfe   :  { %v1950_v35 = vpop.eup %1949  ;;  %1619 = vmatprep.mubr.f32.mxu1 %v1948_v33 }
  0xff   :  { %1959 = vtanh.f32 %v281_v34  ;;  %v1553_v36 = vpop.f32.mrb[8].mxu0  ;;  %1620 = vmatmul.mubr.f32.vlgmr.msra.gmra.mrb[0].mxu1 %v1950_v35 }
 0x100   :  { %1961 = vtanh.f32 %v286_v31  ;;  %v296_v37 = vadd.f32 %v1553_v36, %v2476_v17  ;;  %v290_v38 = vpop.f32.mrb[9].mxu0 }
 0x101   :  { %v1952_v39 = vpop.eup %1951  ;;  %v291_v40 = vadd.f32 %v2476_v17, %v290_v38 }
 0x102   :  { %v1954_v41 = vpop.eup %1953  ;;  %1622 = vmatprep.mubr.f32.mxu1 %v1952_v39 }
 0x103   :  { %1963 = vtanh.f32 %v291_v40  ;;  %v1556_v42 = vpop.f32.mrb[10].mxu0  ;;  %1623 = vmatmul.mubr.f32.gmra.mrb[2].mxu1 %v1954_v41 }
 0x104   :  { %1965 = vtanh.f32 %v296_v37  ;;  %v306_v43 = vadd.f32 %v1556_v42, %v2476_v17  ;;  %v300_v44 = vpop.f32.mrb[11].mxu0 }
 0x105   :  { %v1956_v45 = vpop.eup %1955  ;;  %v301_v46 = vadd.f32 %v2476_v17, %v300_v44 }
 0x106   :  { %v1958_v47 = vpop.eup %1957  ;;  %1625 = vmatprep.mubr.f32.mxu1 %v1956_v45 }
 0x107   :  { %1967 = vtanh.f32 %v301_v46  ;;  %v1559_v48 = vpop.f32.mrb[12].mxu0  ;;  %1626 = vmatmul.mubr.f32.gmra.mrb[4].mxu1 %v1958_v47 }
 0x108   :  { %1969 = vtanh.f32 %v306_v43  ;;  %v316_v49 = vadd.f32 %v1559_v48, %v2476_v17  ;;  %v310_v50 = vpop.f32.mrb[13].mxu0 }
 0x109   :  { %v1960_v51 = vpop.eup %1959  ;;  %v311_v52 = vadd.f32 %v2476_v17, %v310_v50 }
 0x10a   :  { %v1962_v53 = vpop.eup %1961  ;;  %1628 = vmatprep.mubr.f32.mxu1 %v1960_v51  ;;  %v1350_v51 = vld [vmem:[%s2669_s3 + $0xf8] sm:$0xff] }
 0x10b   :  { %1971 = vtanh.f32 %v311_v52  ;;  %v1562_v54 = vpop.f32.mrb[14].mxu0  ;;  %1629 = vmatmul.mubr.f32.gmra.mrb[6].mxu1 %v1962_v53  ;;  %v1003_v53 = vld [vmem:[#allocation2] sm:$0xff] }
 0x10c   :  { %1973 = vtanh.f32 %v316_v49  ;;  %v326_v55 = vadd.f32 %v1562_v54, %v2476_v17  ;;  %v320_v56 = vpop.f32.mrb[15].mxu0  ;;  %v1004_v54 = vld [vmem:[#allocation2 + $0x8] sm:$0xff] }
 0x10d   :  { %v1964_v57 = vpop.eup %1963  ;;  %v321_v58 = vadd.f32 %v2476_v17, %v320_v56  ;;  %v1895_v56 = vpack.c.bf16 %v1004_v54, %v1003_v53 }
 0x10e   :  { %v1966_v59 = vpop.eup %1965  ;;  %1631 = vmatprep.mubr.f32.mxu1 %v1964_v57  ;;  %v1006_v57 = vld [vmem:[#allocation2 + $0x18] sm:$0xff] }
 0x10f   :  { %1975 = vtanh.f32 %v321_v58  ;;  %v1565_v60 = vpop.f32.mrb[16].mxu0  ;;  %1632 = vmatmul.mubr.f32.gmra.mrb[8].mxu1 %v1966_v59  ;;  %1927 = vmatprep.subr.bf16.mxu1 %v1895_v56  ;;  %v1007_v59 = vld [vmem:[#allocation2 + $0x20] sm:$0xff] }
 0x110   :  { %1977 = vtanh.f32 %v326_v55  ;;  %v336_v61 = vadd.f32 %v1565_v60, %v2476_v17  ;;  %v330_v62 = vpop.f32.mrb[17].mxu0  ;;  %v1005_v55 = vld [vmem:[#allocation2 + $0x10] sm:$0xff]  ;;  %1935 = vmatpush3.bf16.msra.mxu1 %v1895_v56  ;;  %v1008_v60 = vld [vmem:[#allocation2 + $0x28] sm:$0xff] }
 0x111   :  { %v1968_v63 = vpop.eup %1967  ;;  %v331_v0 = vadd.f32 %v2476_v17, %v330_v62  ;;  %v2516_v58 = vpack.c.bf16 %v1006_v57, %v1005_v55  ;;  %v1009_v62 = vld [vmem:[#allocation2 + $0x30] sm:$0xff] }
 0x112   :  { %v1970_v1 = vpop.eup %1969  ;;  %1634 = vmatprep.mubr.f32.mxu1 %v1968_v63  ;;  %v1010_v63 = vld [vmem:[#allocation2 + $0x38] sm:$0xff] }
 0x113   :  { %1979 = vtanh.f32 %v331_v0  ;;  %v1568_v2 = vpop.f32.mrb[18].mxu0  ;;  %1635 = vmatmul.mubr.f32.gmra.mrb[10].mxu1 %v1970_v1  ;;  %1928 = vmatprep.subr.bf16.mxu1 %v2516_v58  ;;  %v2523_v0 = vpack.c.bf16 %v1010_v63, %v1009_v62  ;;  %v1011_v1 = vld [vmem:[#allocation2 + $0x40] sm:$0xff] }
 0x114   :  { %1981 = vtanh.f32 %v336_v61  ;;  %v346_v3 = vadd.f32 %v1568_v2, %v2476_v17  ;;  %v340_v4 = vpop.f32.mrb[19].mxu0  ;;  %v2519_v61 = vpack.c.bf16 %v1008_v60, %v1007_v59  ;;  %1936 = vmatpush3.bf16.msra.mxu1 %v2516_v58  ;;  %v1012_v2 = vld [vmem:[#allocation2 + $0x48] sm:$0xff] }
 0x115   :  { %v1972_v5 = vpop.eup %1971  ;;  %v341_v6 = vadd.f32 %v2476_v17, %v340_v4  ;;  %v2535_v4 = vld [vmem:[%s2670_s4] ss:$0 sm:$0xff] }
 0x116   :  { %v1974_v7 = vpop.eup %1973  ;;  %1637 = vmatprep.mubr.f32.mxu1 %v1972_v5  ;;  %1929 = vmatprep.subr.bf16.mxu1 %v2519_v61 }
 0x117   :  { %1983 = vtanh.f32 %v341_v6  ;;  %v1571_v8 = vpop.f32.mrb[20].mxu0  ;;  %1638 = vmatmul.mubr.f32.gmra.mrb[12].mxu1 %v1974_v7 }
 0x118   :  { %1985 = vtanh.f32 %v346_v3  ;;  %v356_v9 = vadd.f32 %v1571_v8, %v2476_v17  ;;  %v350_v10 = vpop.f32.mrb[21].mxu0  ;;  %1937 = vmatpush3.bf16.msra.mxu1 %v2519_v61  ;;  %v2527_v3 = vpack.c.bf16 %v1012_v2, %v1011_v1 }
 0x119   :  { %v1976_v11 = vpop.eup %1975  ;;  %v351_v12 = vadd.f32 %v2476_v17, %v350_v10  ;;  %1930 = vmatprep.subr.bf16.mxu1 %v2523_v0 }
 0x11a   :  { %v1978_v13 = vpop.eup %1977  ;;  %1640 = vmatprep.mubr.f32.mxu1 %v1976_v11 }
 0x11b   :  { %1987 = vtanh.f32 %v351_v12  ;;  %v1574_v14 = vpop.f32.mrb[22].mxu0  ;;  %1641 = vmatmul.mubr.f32.gmra.mrb[14].mxu1 %v1978_v13 }
 0x11c   :  { %1989 = vtanh.f32 %v356_v9  ;;  %v366_v15 = vadd.f32 %v1574_v14, %v2476_v17  ;;  %v360_v16 = vpop.f32.mrb[23].mxu0  ;;  %1938 = vmatpush3.bf16.msra.mxu1 %v2523_v0 }
 0x11d   :  { %v1980_v18 = vpop.eup %1979  ;;  %v361_v19 = vadd.f32 %v2476_v17, %v360_v16  ;;  %1931 = vmatprep.subr.bf16.mxu1 %v2527_v3 }
 0x11e   :  { %v1982_v20 = vpop.eup %1981  ;;  %1643 = vmatprep.mubr.f32.mxu1 %v1980_v18 }
 0x11f   :  { %1991 = vtanh.f32 %v361_v19  ;;  %v1577_v21 = vpop.f32.mrb[24].mxu0  ;;  %1644 = vmatmul.mubr.f32.gmra.mrb[16].mxu1 %v1982_v20 }
 0x120   :  { %1993 = vtanh.f32 %v366_v15  ;;  %v376_v22 = vadd.f32 %v1577_v21, %v2476_v17  ;;  %v370_v23 = vpop.f32.mrb[25].mxu0  ;;  %1939 = vmatpush3.bf16.msra.mxu1 %v2527_v3 }
 0x121   :  { %v1984_v24 = vpop.eup %1983  ;;  %v371_v25 = vadd.f32 %v2476_v17, %v370_v23 }
 0x122   :  { %v1986_v26 = vpop.eup %1985  ;;  %1646 = vmatprep.mubr.f32.mxu1 %v1984_v24 }
 0x123   :  { %1995 = vtanh.f32 %v371_v25  ;;  %v1580_v27 = vpop.f32.mrb[26].mxu0  ;;  %1647 = vmatmul.mubr.f32.gmra.mrb[18].mxu1 %v1986_v26 }
 0x124   :  { %1997 = vtanh.f32 %v376_v22  ;;  %v386_v28 = vadd.f32 %v1580_v27, %v2476_v17  ;;  %v380_v29 = vpop.f32.mrb[27].mxu0 }
 0x125   :  { %v1988_v30 = vpop.eup %1987  ;;  %v381_v31 = vadd.f32 %v2476_v17, %v380_v29 }
 0x126   :  { %v1990_v32 = vpop.eup %1989  ;;  %1649 = vmatprep.mubr.f32.mxu1 %v1988_v30 }
 0x127   :  { %1999 = vtanh.f32 %v381_v31  ;;  %v1583_v33 = vpop.f32.mrb[28].mxu0  ;;  %1650 = vmatmul.mubr.f32.gmra.mrb[20].mxu1 %v1990_v32 }
 0x128   :  { %2001 = vtanh.f32 %v386_v28  ;;  %v396_v34 = vadd.f32 %v1583_v33, %v2476_v17  ;;  %v390_v35 = vpop.f32.mrb[29].mxu0 }
 0x129   :  { %v1992_v36 = vpop.eup %1991  ;;  %v391_v37 = vadd.f32 %v2476_v17, %v390_v35 }
 0x12a   :  { %v1994_v38 = vpop.eup %1993  ;;  %1652 = vmatprep.mubr.f32.mxu1 %v1992_v36 }
 0x12b   :  { %2003 = vtanh.f32 %v391_v37  ;;  %v1586_v39 = vpop.f32.mrb[30].mxu0  ;;  %1653 = vmatmul.mubr.f32.gmra.mrb[22].mxu1 %v1994_v38 }
 0x12c   :  { %2005 = vtanh.f32 %v396_v34  ;;  %v406_v40 = vadd.f32 %v1586_v39, %v2476_v17  ;;  %v400_v41 = vpop.f32.mrb[31].mxu0 }
 0x12d   :  { %v1996_v42 = vpop.eup %1995  ;;  %v401_v43 = vadd.f32 %v2476_v17, %v400_v41  ;;  %v1349_v17 = vld [vmem:[%s2669_s3 + $0xf0] sm:$0xff] }
 0x12e   :  { %v1998_v44 = vpop.eup %1997  ;;  %1655 = vmatprep.mubr.f32.mxu1 %v1996_v42  ;;  %v1891_v52 = vpack.c.bf16 %v1350_v51, %v1349_v17 }
 0x12f   :  { %2007 = vtanh.f32 %v401_v43  ;;  %1656 = vmatmul.mubr.f32.gmra.mrb[24].mxu1 %v1998_v44 }
 0x130   :  { %2009 = vtanh.f32 %v406_v40  ;;  %1892 = vmatprep.subr.bf16.mxu0 %v1891_v52 }
 0x131   :  { %v2000_v45 = vpop.eup %1999  ;;  %1894 = vmatpush3.bf16.msra.mxu0 %v1891_v52 }
 0x132   :  { %v2002_v46 = vpop.eup %2001  ;;  %1658 = vmatprep.mubr.f32.mxu1 %v2000_v45  ;;  %1896 = vmatprep.subr.bf16.mxu0 %v1895_v56 }
 0x133   :  { %1659 = vmatmul.mubr.f32.gmra.mrb[26].mxu1 %v2002_v46 }
 0x135   :  { %v2004_v47 = vpop.eup %2003 }
 0x136   :  { %v2006_v48 = vpop.eup %2005  ;;  %1661 = vmatprep.mubr.f32.mxu1 %v2004_v47 }
 0x137   :  { %1662 = vmatmul.mubr.f32.gmra.mrb[28].mxu1 %v2006_v48 }
 0x139   :  { %v2008_v49 = vpop.eup %2007 }
 0x13a   :  { %v2010_v50 = vpop.eup %2009  ;;  %1664 = vmatprep.mubr.f32.mxu1 %v2008_v49 }
 0x13b   :  { %1665 = vmatmul.mubr.f32.gmra.mrb[30].mxu1 %v2010_v50 }
 0x1d2   :  { %v1621_v5 = vpop.f32.mrb[0].mxu1 }
 0x1d3   :  { %v536_v6 = vadd.f32 %v1621_v5, %v2535_v4  ;;  %v530_v7 = vpop.f32.mrb[1].mxu1 }
 0x1d4   :  { %v531_v8 = vadd.f32 %v2535_v4, %v530_v7 }
 0x1d6   :  { %2011 = vtanh.f32 %v531_v8  ;;  %v1624_v9 = vpop.f32.mrb[2].mxu1 }
 0x1d7   :  { %2013 = vtanh.f32 %v536_v6  ;;  %v546_v10 = vadd.f32 %v1624_v9, %v2535_v4  ;;  %v540_v11 = vpop.f32.mrb[3].mxu1 }
 0x1d8   :  { %v541_v12 = vadd.f32 %v2535_v4, %v540_v11 }
 0x1da   :  { %2015 = vtanh.f32 %v541_v12  ;;  %v1627_v13 = vpop.f32.mrb[4].mxu1 }
 0x1db   :  { %2017 = vtanh.f32 %v546_v10  ;;  %v556_v14 = vadd.f32 %v1627_v13, %v2535_v4  ;;  %v550_v15 = vpop.f32.mrb[5].mxu1 }
 0x1dc   :  { %v551_v16 = vadd.f32 %v2535_v4, %v550_v15 }
 0x1de   :  { %2019 = vtanh.f32 %v551_v16  ;;  %v1630_v18 = vpop.f32.mrb[6].mxu1 }
 0x1df   :  { %2021 = vtanh.f32 %v556_v14  ;;  %v566_v19 = vadd.f32 %v1630_v18, %v2535_v4  ;;  %v560_v20 = vpop.f32.mrb[7].mxu1 }
 0x1e0   :  { %v2012_v21 = vpop.eup %2011  ;;  %v561_v22 = vadd.f32 %v2535_v4, %v560_v20 }
 0x1e1   :  { %v2014_v23 = vpop.eup %2013  ;;  %1699 = vmatprep.mubr.f32.mxu0 %v2012_v21 }
 0x1e2   :  { %2023 = vtanh.f32 %v561_v22  ;;  %v1633_v24 = vpop.f32.mrb[8].mxu1  ;;  %1700 = vmatmul.mubr.f32.vlgmr.msra.gmra.mrb[32].mxu0 %v2014_v23 }
 0x1e3   :  { %2025 = vtanh.f32 %v566_v19  ;;  %v576_v25 = vadd.f32 %v1633_v24, %v2535_v4  ;;  %v570_v26 = vpop.f32.mrb[9].mxu1  ;;  %1898 = vmatpush3.bf16.msra.mxu0 %v1895_v56 }
 0x1e4   :  { %v2016_v27 = vpop.eup %2015  ;;  %v571_v28 = vadd.f32 %v2535_v4, %v570_v26  ;;  %1900 = vmatprep.subr.bf16.mxu0 %v2516_v58 }
 0x1e5   :  { %v2018_v29 = vpop.eup %2017  ;;  %1702 = vmatprep.mubr.f32.mxu0 %v2016_v27 }
 0x1e6   :  { %2027 = vtanh.f32 %v571_v28  ;;  %v1636_v30 = vpop.f32.mrb[10].mxu1  ;;  %1703 = vmatmul.mubr.f32.gmra.mrb[34].mxu0 %v2018_v29 }
 0x1e7   :  { %2029 = vtanh.f32 %v576_v25  ;;  %v586_v31 = vadd.f32 %v1636_v30, %v2535_v4  ;;  %v580_v32 = vpop.f32.mrb[11].mxu1  ;;  %1902 = vmatpush3.bf16.msra.mxu0 %v2516_v58 }
 0x1e8   :  { %v2020_v33 = vpop.eup %2019  ;;  %v581_v34 = vadd.f32 %v2535_v4, %v580_v32  ;;  %1904 = vmatprep.subr.bf16.mxu0 %v2519_v61 }
 0x1e9   :  { %v2022_v35 = vpop.eup %2021  ;;  %1705 = vmatprep.mubr.f32.mxu0 %v2020_v33 }
 0x1ea   :  { %2031 = vtanh.f32 %v581_v34  ;;  %v1639_v36 = vpop.f32.mrb[12].mxu1  ;;  %1706 = vmatmul.mubr.f32.gmra.mrb[36].mxu0 %v2022_v35 }
 0x1eb   :  { %2033 = vtanh.f32 %v586_v31  ;;  %v596_v37 = vadd.f32 %v1639_v36, %v2535_v4  ;;  %v590_v38 = vpop.f32.mrb[13].mxu1  ;;  %1906 = vmatpush3.bf16.msra.mxu0 %v2519_v61 }
 0x1ec   :  { %v2024_v39 = vpop.eup %2023  ;;  %v591_v40 = vadd.f32 %v2535_v4, %v590_v38  ;;  %1908 = vmatprep.subr.bf16.mxu0 %v2523_v0 }
 0x1ed   :  { %v2026_v41 = vpop.eup %2025  ;;  %1708 = vmatprep.mubr.f32.mxu0 %v2024_v39  ;;  %v1013_v39 = vld [vmem:[#allocation2 + $0x50] sm:$0xff] }
 0x1ee   :  { %2035 = vtanh.f32 %v591_v40  ;;  %v1642_v42 = vpop.f32.mrb[14].mxu1  ;;  %1709 = vmatmul.mubr.f32.gmra.mrb[38].mxu0 %v2026_v41  ;;  %v1014_v40 = vld [vmem:[#allocation2 + $0x58] sm:$0xff]  ;;  %v1015_v41 = vld [vmem:[#allocation2 + $0x60] sm:$0xff] }
 0x1ef   :  { %2037 = vtanh.f32 %v596_v37  ;;  %v606_v43 = vadd.f32 %v1642_v42, %v2535_v4  ;;  %v600_v44 = vpop.f32.mrb[15].mxu1  ;;  %1910 = vmatpush3.bf16.msra.mxu0 %v2523_v0  ;;  %v1016_v42 = vld [vmem:[#allocation2 + $0x68] sm:$0xff] }
 0x1f0   :  { %v2028_v45 = vpop.eup %2027  ;;  %v601_v46 = vadd.f32 %v2535_v4, %v600_v44  ;;  %1912 = vmatprep.subr.bf16.mxu0 %v2527_v3  ;;  %v1017_v44 = vld [vmem:[#allocation2 + $0x70] sm:$0xff] }
 0x1f1   :  { %v2030_v47 = vpop.eup %2029  ;;  %1711 = vmatprep.mubr.f32.mxu0 %v2028_v45  ;;  %v1018_v45 = vld [vmem:[#allocation2 + $0x78] sm:$0xff] }
 0x1f2   :  { %2039 = vtanh.f32 %v601_v46  ;;  %v1645_v48 = vpop.f32.mrb[16].mxu1  ;;  %1712 = vmatmul.mubr.f32.gmra.mrb[40].mxu0 %v2030_v47  ;;  %v1923_v46 = vpack.c.bf16 %v1018_v45, %v1017_v44  ;;  %v2580_v47 = vld [vmem:[%s2670_s4 + $0x1] ss:$0 sm:$0xff] }
 0x1f3   :  { %2041 = vtanh.f32 %v606_v43  ;;  %v616_v49 = vadd.f32 %v1645_v48, %v2535_v4  ;;  %v610_v50 = vpop.f32.mrb[17].mxu1  ;;  %1914 = vmatpush3.bf16.msra.mxu0 %v2527_v3  ;;  %v1919_v43 = vpack.c.bf16 %v1016_v42, %v1015_v41 }
 0x1f4   :  { %v2032_v17 = vpop.eup %2031  ;;  %v611_v51 = vadd.f32 %v2535_v4, %v610_v50 }
 0x1f5   :  { %v2034_v52 = vpop.eup %2033  ;;  %1714 = vmatprep.mubr.f32.mxu0 %v2032_v17 }
 0x1f6   :  { %2043 = vtanh.f32 %v611_v51  ;;  %v1648_v53 = vpop.f32.mrb[18].mxu1  ;;  %1715 = vmatmul.mubr.f32.gmra.mrb[42].mxu0 %v2034_v52 }
 0x1f7   :  { %2045 = vtanh.f32 %v616_v49  ;;  %v626_v54 = vadd.f32 %v1648_v53, %v2535_v4  ;;  %v620_v55 = vpop.f32.mrb[19].mxu1 }
 0x1f8   :  { %v2036_v56 = vpop.eup %2035  ;;  %v621_v57 = vadd.f32 %v2535_v4, %v620_v55 }
 0x1f9   :  { %v2038_v58 = vpop.eup %2037  ;;  %1717 = vmatprep.mubr.f32.mxu0 %v2036_v56 }
 0x1fa   :  { %2047 = vtanh.f32 %v621_v57  ;;  %v1651_v59 = vpop.f32.mrb[20].mxu1  ;;  %1718 = vmatmul.mubr.f32.gmra.mrb[44].mxu0 %v2038_v58 }
 0x1fb   :  { %2049 = vtanh.f32 %v626_v54  ;;  %v636_v60 = vadd.f32 %v1651_v59, %v2535_v4  ;;  %v630_v61 = vpop.f32.mrb[21].mxu1 }
 0x1fc   :  { %v2040_v62 = vpop.eup %2039  ;;  %v631_v63 = vadd.f32 %v2535_v4, %v630_v61 }
 0x1fd   :  { %v2042_v0 = vpop.eup %2041  ;;  %1720 = vmatprep.mubr.f32.mxu0 %v2040_v62 }
 0x1fe   :  { %2051 = vtanh.f32 %v631_v63  ;;  %v1654_v1 = vpop.f32.mrb[22].mxu1  ;;  %1721 = vmatmul.mubr.f32.gmra.mrb[46].mxu0 %v2042_v0 }
 0x1ff   :  { %2053 = vtanh.f32 %v636_v60  ;;  %v646_v2 = vadd.f32 %v1654_v1, %v2535_v4  ;;  %v640_v3 = vpop.f32.mrb[23].mxu1 }
 0x200   :  { %v2044_v5 = vpop.eup %2043  ;;  %v641_v6 = vadd.f32 %v2535_v4, %v640_v3 }
 0x201   :  { %v2046_v7 = vpop.eup %2045  ;;  %1723 = vmatprep.mubr.f32.mxu0 %v2044_v5 }
 0x202   :  { %2055 = vtanh.f32 %v641_v6  ;;  %v1657_v8 = vpop.f32.mrb[24].mxu1  ;;  %1724 = vmatmul.mubr.f32.gmra.mrb[48].mxu0 %v2046_v7 }
 0x203   :  { %2057 = vtanh.f32 %v646_v2  ;;  %v656_v9 = vadd.f32 %v1657_v8, %v2535_v4  ;;  %v650_v10 = vpop.f32.mrb[25].mxu1 }
 0x204   :  { %v2048_v11 = vpop.eup %2047  ;;  %v651_v12 = vadd.f32 %v2535_v4, %v650_v10 }
 0x205   :  { %v2050_v13 = vpop.eup %2049  ;;  %1726 = vmatprep.mubr.f32.mxu0 %v2048_v11 }
 0x206   :  { %2059 = vtanh.f32 %v651_v12  ;;  %v1660_v14 = vpop.f32.mrb[26].mxu1  ;;  %1727 = vmatmul.mubr.f32.gmra.mrb[50].mxu0 %v2050_v13 }
 0x207   :  { %2061 = vtanh.f32 %v656_v9  ;;  %v666_v15 = vadd.f32 %v1660_v14, %v2535_v4  ;;  %v660_v16 = vpop.f32.mrb[27].mxu1 }
 0x208   :  { %v2052_v18 = vpop.eup %2051  ;;  %v661_v19 = vadd.f32 %v2535_v4, %v660_v16 }
 0x209   :  { %v2054_v20 = vpop.eup %2053  ;;  %1729 = vmatprep.mubr.f32.mxu0 %v2052_v18 }
 0x20a   :  { %2063 = vtanh.f32 %v661_v19  ;;  %v1663_v21 = vpop.f32.mrb[28].mxu1  ;;  %1730 = vmatmul.mubr.f32.gmra.mrb[52].mxu0 %v2054_v20 }
 0x20b   :  { %2065 = vtanh.f32 %v666_v15  ;;  %v676_v22 = vadd.f32 %v1663_v21, %v2535_v4  ;;  %v670_v23 = vpop.f32.mrb[29].mxu1 }
 0x20c   :  { %v2056_v24 = vpop.eup %2055  ;;  %v671_v25 = vadd.f32 %v2535_v4, %v670_v23 }
 0x20d   :  { %v2058_v26 = vpop.eup %2057  ;;  %1732 = vmatprep.mubr.f32.mxu0 %v2056_v24 }
 0x20e   :  { %2067 = vtanh.f32 %v671_v25  ;;  %v1666_v27 = vpop.f32.mrb[30].mxu1  ;;  %1733 = vmatmul.mubr.f32.gmra.mrb[54].mxu0 %v2058_v26 }
 0x20f   :  { %2069 = vtanh.f32 %v676_v22  ;;  %v686_v28 = vadd.f32 %v1666_v27, %v2535_v4  ;;  %v680_v29 = vpop.f32.mrb[31].mxu1 }
 0x210   :  { %v2060_v30 = vpop.eup %2059  ;;  %v681_v31 = vadd.f32 %v2535_v4, %v680_v29  ;;  %v1915_v4 = vpack.c.bf16 %v1014_v40, %v1013_v39 }
 0x211   :  { %v2062_v32 = vpop.eup %2061  ;;  %1735 = vmatprep.mubr.f32.mxu0 %v2060_v30 }
 0x212   :  { %2071 = vtanh.f32 %v681_v31  ;;  %1736 = vmatmul.mubr.f32.gmra.mrb[56].mxu0 %v2062_v32  ;;  %1932 = vmatprep.subr.bf16.mxu1 %v1915_v4 }
 0x213   :  { %2073 = vtanh.f32 %v686_v28  ;;  %1916 = vmatprep.subr.bf16.mxu0 %v1915_v4  ;;  %1940 = vmatpush3.bf16.msra.mxu1 %v1915_v4 }
 0x214   :  { %v2064_v33 = vpop.eup %2063  ;;  %1918 = vmatpush3.bf16.msra.mxu0 %v1915_v4  ;;  %1933 = vmatprep.subr.bf16.mxu1 %v1919_v43 }
 0x215   :  { %v2066_v34 = vpop.eup %2065  ;;  %1738 = vmatprep.mubr.f32.mxu0 %v2064_v33  ;;  %1920 = vmatprep.subr.bf16.mxu0 %v1919_v43 }
 0x216   :  { %1739 = vmatmul.mubr.f32.gmra.mrb[58].mxu0 %v2066_v34 }
 0x217   :  { %1941 = vmatpush3.bf16.msra.mxu1 %v1919_v43 }
 0x218   :  { %v2068_v35 = vpop.eup %2067  ;;  %1922 = vmatpush3.bf16.msra.mxu0 %v1919_v43  ;;  %1934 = vmatprep.subr.bf16.mxu1 %v1923_v46 }
 0x219   :  { %v2070_v36 = vpop.eup %2069  ;;  %1741 = vmatprep.mubr.f32.mxu0 %v2068_v35  ;;  %1924 = vmatprep.subr.bf16.mxu0 %v1923_v46 }
 0x21a   :  { %1742 = vmatmul.mubr.f32.gmra.mrb[60].mxu0 %v2070_v36 }
 0x21b   :  { %1942 = vmatpush3.bf16.msra.mxu1 %v1923_v46 }
 0x21c   :  { %v2072_v37 = vpop.eup %2071  ;;  %1926 = vmatpush3.bf16.msra.mxu0 %v1923_v46 }
 0x21d   :  { %v2074_v38 = vpop.eup %2073  ;;  %1744 = vmatprep.mubr.f32.mxu0 %v2072_v37 }
 0x21e   :  { %1745 = vmatmul.mubr.f32.gmra.mrb[62].mxu0 %v2074_v38 }
 0x2b5   :  { %v1701_v48 = vpop.f32.mrb[32].mxu0 }
 0x2b6   :  { %v818_v49 = vadd.f32 %v1701_v48, %v2580_v47  ;;  %v812_v50 = vpop.f32.mrb[33].mxu0 }
 0x2b7   :  { %v813_v17 = vadd.f32 %v2580_v47, %v812_v50 }
 0x2b9   :  { %2075 = vtanh.f32 %v813_v17  ;;  %v1704_v51 = vpop.f32.mrb[34].mxu0 }
 0x2ba   :  { %2077 = vtanh.f32 %v818_v49  ;;  %v828_v52 = vadd.f32 %v1704_v51, %v2580_v47  ;;  %v822_v53 = vpop.f32.mrb[35].mxu0 }
 0x2bb   :  { %v823_v54 = vadd.f32 %v2580_v47, %v822_v53 }
 0x2bd   :  { %2079 = vtanh.f32 %v823_v54  ;;  %v1707_v55 = vpop.f32.mrb[36].mxu0 }
 0x2be   :  { %2081 = vtanh.f32 %v828_v52  ;;  %v838_v56 = vadd.f32 %v1707_v55, %v2580_v47  ;;  %v832_v57 = vpop.f32.mrb[37].mxu0 }
 0x2bf   :  { %v833_v58 = vadd.f32 %v2580_v47, %v832_v57 }
 0x2c1   :  { %2083 = vtanh.f32 %v833_v58  ;;  %v1710_v59 = vpop.f32.mrb[38].mxu0 }
 0x2c2   :  { %2085 = vtanh.f32 %v838_v56  ;;  %v848_v60 = vadd.f32 %v1710_v59, %v2580_v47  ;;  %v842_v61 = vpop.f32.mrb[39].mxu0 }
 0x2c3   :  { %v2076_v62 = vpop.eup %2075  ;;  %v843_v63 = vadd.f32 %v2580_v47, %v842_v61 }
 0x2c4   :  { %v2078_v0 = vpop.eup %2077  ;;  %1779 = vmatprep.mubr.f32.mxu0 %v2076_v62 }
 0x2c5   :  { %2087 = vtanh.f32 %v843_v63  ;;  %v1713_v1 = vpop.f32.mrb[40].mxu0  ;;  %1780 = vmatmul.mubr.f32.vlgmr.msra.gmra.mrb[64].mxu0 %v2078_v0 }
 0x2c6   :  { %2089 = vtanh.f32 %v848_v60  ;;  %v858_v2 = vadd.f32 %v1713_v1, %v2580_v47  ;;  %v852_v3 = vpop.f32.mrb[41].mxu0 }
 0x2c7   :  { %v2080_v5 = vpop.eup %2079  ;;  %v853_v6 = vadd.f32 %v2580_v47, %v852_v3 }
 0x2c8   :  { %v2082_v7 = vpop.eup %2081  ;;  %1782 = vmatprep.mubr.f32.mxu0 %v2080_v5 }
 0x2c9   :  { %2091 = vtanh.f32 %v853_v6  ;;  %v1716_v8 = vpop.f32.mrb[42].mxu0  ;;  %1783 = vmatmul.mubr.f32.gmra.mrb[66].mxu0 %v2082_v7 }
 0x2ca   :  { %2093 = vtanh.f32 %v858_v2  ;;  %v868_v9 = vadd.f32 %v1716_v8, %v2580_v47  ;;  %v862_v10 = vpop.f32.mrb[43].mxu0 }
 0x2cb   :  { %v2084_v11 = vpop.eup %2083  ;;  %v863_v12 = vadd.f32 %v2580_v47, %v862_v10 }
 0x2cc   :  { %v2086_v13 = vpop.eup %2085  ;;  %1785 = vmatprep.mubr.f32.mxu0 %v2084_v11 }
 0x2cd   :  { %2095 = vtanh.f32 %v863_v12  ;;  %v1719_v14 = vpop.f32.mrb[44].mxu0  ;;  %1786 = vmatmul.mubr.f32.gmra.mrb[68].mxu0 %v2086_v13 }
 0x2ce   :  { %2097 = vtanh.f32 %v868_v9  ;;  %v878_v15 = vadd.f32 %v1719_v14, %v2580_v47  ;;  %v872_v16 = vpop.f32.mrb[45].mxu0 }
 0x2cf   :  { %v2088_v18 = vpop.eup %2087  ;;  %v873_v19 = vadd.f32 %v2580_v47, %v872_v16 }
 0x2d0   :  { %v2090_v20 = vpop.eup %2089  ;;  %1788 = vmatprep.mubr.f32.mxu1 %v2088_v18 }
 0x2d1   :  { %2099 = vtanh.f32 %v873_v19  ;;  %v1722_v21 = vpop.f32.mrb[46].mxu0  ;;  %1789 = vmatmul.mubr.f32.vlgmr.msra.gmra.mrb[32].mxu1 %v2090_v20 }
 0x2d2   :  { %2101 = vtanh.f32 %v878_v15  ;;  %v888_v22 = vadd.f32 %v1722_v21, %v2580_v47  ;;  %v882_v23 = vpop.f32.mrb[47].mxu0 }
 0x2d3   :  { %v2092_v24 = vpop.eup %2091  ;;  %v883_v25 = vadd.f32 %v2580_v47, %v882_v23 }
 0x2d4   :  { %v2094_v26 = vpop.eup %2093  ;;  %1791 = vmatprep.mubr.f32.mxu1 %v2092_v24 }
 0x2d5   :  { %2103 = vtanh.f32 %v883_v25  ;;  %v1725_v27 = vpop.f32.mrb[48].mxu0  ;;  %1792 = vmatmul.mubr.f32.gmra.mrb[34].mxu1 %v2094_v26 }
 0x2d6   :  { %2105 = vtanh.f32 %v888_v22  ;;  %v898_v28 = vadd.f32 %v1725_v27, %v2580_v47  ;;  %v892_v29 = vpop.f32.mrb[49].mxu0 }
 0x2d7   :  { %v2096_v30 = vpop.eup %2095  ;;  %v893_v31 = vadd.f32 %v2580_v47, %v892_v29 }
 0x2d8   :  { %v2098_v32 = vpop.eup %2097  ;;  %1794 = vmatprep.mubr.f32.mxu1 %v2096_v30 }
 0x2d9   :  { %2107 = vtanh.f32 %v893_v31  ;;  %v1728_v33 = vpop.f32.mrb[50].mxu0  ;;  %1795 = vmatmul.mubr.f32.gmra.mrb[36].mxu1 %v2098_v32 }
 0x2da   :  { %2109 = vtanh.f32 %v898_v28  ;;  %v908_v34 = vadd.f32 %v1728_v33, %v2580_v47  ;;  %v902_v35 = vpop.f32.mrb[51].mxu0 }
 0x2db   :  { %v2100_v36 = vpop.eup %2099  ;;  %v903_v37 = vadd.f32 %v2580_v47, %v902_v35 }
 0x2dc   :  { %v2102_v38 = vpop.eup %2101  ;;  %1797 = vmatprep.mubr.f32.mxu1 %v2100_v36 }
 0x2dd   :  { %2111 = vtanh.f32 %v903_v37  ;;  %v1731_v39 = vpop.f32.mrb[52].mxu0  ;;  %1798 = vmatmul.mubr.f32.gmra.mrb[38].mxu1 %v2102_v38 }
 0x2de   :  { %2113 = vtanh.f32 %v908_v34  ;;  %v918_v40 = vadd.f32 %v1731_v39, %v2580_v47  ;;  %v912_v4 = vpop.f32.mrb[53].mxu0 }
 0x2df   :  { %v2104_v41 = vpop.eup %2103  ;;  %v913_v42 = vadd.f32 %v2580_v47, %v912_v4 }
 0x2e0   :  { %v2106_v43 = vpop.eup %2105  ;;  %1800 = vmatprep.mubr.f32.mxu1 %v2104_v41 }
 0x2e1   :  { %2115 = vtanh.f32 %v913_v42  ;;  %v1734_v44 = vpop.f32.mrb[54].mxu0  ;;  %1801 = vmatmul.mubr.f32.gmra.mrb[40].mxu1 %v2106_v43 }
 0x2e2   :  { %2117 = vtanh.f32 %v918_v40  ;;  %v928_v45 = vadd.f32 %v1734_v44, %v2580_v47  ;;  %v922_v46 = vpop.f32.mrb[55].mxu0 }
 0x2e3   :  { %v2108_v48 = vpop.eup %2107  ;;  %v923_v49 = vadd.f32 %v2580_v47, %v922_v46 }
 0x2e4   :  { %v2110_v50 = vpop.eup %2109  ;;  %1803 = vmatprep.mubr.f32.mxu1 %v2108_v48 }
 0x2e5   :  { %2119 = vtanh.f32 %v923_v49  ;;  %v1737_v17 = vpop.f32.mrb[56].mxu0  ;;  %1804 = vmatmul.mubr.f32.gmra.mrb[42].mxu1 %v2110_v50 }
 0x2e6   :  { %2121 = vtanh.f32 %v928_v45  ;;  %v938_v51 = vadd.f32 %v1737_v17, %v2580_v47  ;;  %v932_v52 = vpop.f32.mrb[57].mxu0 }
 0x2e7   :  { %v2112_v53 = vpop.eup %2111  ;;  %v933_v54 = vadd.f32 %v2580_v47, %v932_v52 }
 0x2e8   :  { %v2114_v55 = vpop.eup %2113  ;;  %1806 = vmatprep.mubr.f32.mxu1 %v2112_v53 }
 0x2e9   :  { %2123 = vtanh.f32 %v933_v54  ;;  %v1740_v56 = vpop.f32.mrb[58].mxu0  ;;  %1807 = vmatmul.mubr.f32.gmra.mrb[44].mxu1 %v2114_v55 }
 0x2ea   :  { %2125 = vtanh.f32 %v938_v51  ;;  %v948_v57 = vadd.f32 %v1740_v56, %v2580_v47  ;;  %v942_v58 = vpop.f32.mrb[59].mxu0 }
 0x2eb   :  { %v2116_v59 = vpop.eup %2115  ;;  %v943_v60 = vadd.f32 %v2580_v47, %v942_v58 }
 0x2ec   :  { %v2118_v61 = vpop.eup %2117  ;;  %1809 = vmatprep.mubr.f32.mxu1 %v2116_v59 }
 0x2ed   :  { %2127 = vtanh.f32 %v943_v60  ;;  %v1743_v62 = vpop.f32.mrb[60].mxu0  ;;  %1810 = vmatmul.mubr.f32.gmra.mrb[46].mxu1 %v2118_v61 }
 0x2ee   :  { %2129 = vtanh.f32 %v948_v57  ;;  %v958_v63 = vadd.f32 %v1743_v62, %v2580_v47  ;;  %v952_v0 = vpop.f32.mrb[61].mxu0 }
 0x2ef   :  { %v2120_v1 = vpop.eup %2119  ;;  %v953_v2 = vadd.f32 %v2580_v47, %v952_v0 }
 0x2f0   :  { %v2122_v3 = vpop.eup %2121  ;;  %1812 = vmatprep.mubr.f32.mxu1 %v2120_v1 }
 0x2f1   :  { %2131 = vtanh.f32 %v953_v2  ;;  %v1746_v5 = vpop.f32.mrb[62].mxu0  ;;  %1813 = vmatmul.mubr.f32.gmra.mrb[48].mxu1 %v2122_v3 }
 0x2f2   :  { %2133 = vtanh.f32 %v958_v63  ;;  %v968_v6 = vadd.f32 %v1746_v5, %v2580_v47  ;;  %v962_v7 = vpop.f32.mrb[63].mxu0 }
 0x2f3   :  { %v2124_v8 = vpop.eup %2123  ;;  %v963_v9 = vadd.f32 %v2580_v47, %v962_v7  ;;  %v2617_v47 = vld [vmem:[%s2672_s6] ss:$0 sm:$0xff]  ;;  %s2190_s6 = smov [#allocation5]  }
 0x2f4   :  { %v2126_v10 = vpop.eup %2125  ;;  %1815 = vmatprep.mubr.f32.mxu1 %v2124_v8  ;;  %s1288_s14 = sshll.u32 %s2190_s6, 4  ;;  %s1289_s14 = int_to_ptr.vmem [resolvable:$true] %s1288_s14 }
 0x2f5   :  { %2135 = vtanh.f32 %v963_v9  ;;  %1816 = vmatmul.mubr.f32.gmra.mrb[50].mxu1 %v2126_v10  ;;  %s2161_s15 = scalar_lea.vmem %s1289_s14, 4096  ;;  %p2166_p9 = scmp.lt.s32.totalorder %s1289_s14, %s1289_s14 }
 0x2f6   :  { %2137 = vtanh.f32 %v968_v6  ;;  %p2162_p8 = scmp.ne.s32.totalorder %s1289_s14, %s2161_s15  ;;  %p2167_p10 = scmp.lt.s32.totalorder %s2161_s15, %s2161_s15 }
 0x2f7   :  { %v2128_v11 = vpop.eup %2127 }
 0x2f8   :  { %v2130_v12 = vpop.eup %2129  ;;  %1818 = vmatprep.mubr.f32.mxu1 %v2128_v11  ;;  %p2168_p11 = por %p2167_p10, %p2166_p9 }
 0x2f9   :  { %1819 = vmatmul.mubr.f32.gmra.mrb[52].mxu1 %v2130_v12 }
 0x2fa   :  { %p2169_p12 = pnand %p2168_p11, %p2162_p8 }
 0x2fb   :  { %v2132_v13 = vpop.eup %2131 }
 0x2fc   :  { %v2134_v14 = vpop.eup %2133  ;;  %1821 = vmatprep.mubr.f32.mxu1 %v2132_v13 }
 0x2fd   :  { %1822 = vmatmul.mubr.f32.gmra.mrb[54].mxu1 %v2134_v14 }
 0x2ff   :  { %v2136_v15 = vpop.eup %2135 }
 0x300   :  { %v2138_v16 = vpop.eup %2137  ;;  %1824 = vmatprep.mubr.f32.mxu1 %v2136_v15 }
 0x301   :  { %1825 = vmatmul.mubr.f32.gmra.mrb[56].mxu1 %v2138_v16 }
 0x398   :  { %v1781_v18 = vpop.f32.mrb[64].mxu0 }
 0x399   :  { %v1098_v19 = vadd.f32 %v1781_v18, %v2617_v47  ;;  %v1092_v20 = vpop.f32.mrb[65].mxu0 }
 0x39a   :  { %v1093_v21 = vadd.f32 %v2617_v47, %v1092_v20 }
 0x39b   :  { %1252 = vst [vmem:[#allocation5 + $0x8] sm:$0xff] %v1098_v19 }
 0x39c   :  { %1251 = vst [vmem:[#allocation5] sm:$0xff] %v1093_v21  ;;  %v1784_v22 = vpop.f32.mrb[66].mxu0 }
 0x39d   :  { %v1108_v23 = vadd.f32 %v1784_v22, %v2617_v47  ;;  %v1102_v24 = vpop.f32.mrb[67].mxu0 }
 0x39e   :  { %v1103_v25 = vadd.f32 %v2617_v47, %v1102_v24 }
 0x39f   :  { %1254 = vst [vmem:[#allocation5 + $0x18] sm:$0xff] %v1108_v23 }
 0x3a0   :  { %1253 = vst [vmem:[#allocation5 + $0x10] sm:$0xff] %v1103_v25  ;;  %v1787_v26 = vpop.f32.mrb[68].mxu0 }
 0x3a1   :  { %v1118_v27 = vadd.f32 %v1787_v26, %v2617_v47  ;;  %v1112_v28 = vpop.f32.mrb[69].mxu0 }
 0x3a2   :  { %v1113_v29 = vadd.f32 %v2617_v47, %v1112_v28 }
 0x3a3   :  { %1256 = vst [vmem:[#allocation5 + $0x28] sm:$0xff] %v1118_v27 }
 0x3a4   :  { %1255 = vst [vmem:[#allocation5 + $0x20] sm:$0xff] %v1113_v29  ;;  %v1790_v30 = vpop.f32.mrb[32].mxu1 }
 0x3a5   :  { %v1128_v31 = vadd.f32 %v1790_v30, %v2617_v47  ;;  %v1122_v32 = vpop.f32.mrb[33].mxu1 }
 0x3a6   :  { %v1123_v33 = vadd.f32 %v2617_v47, %v1122_v32 }
 0x3a7   :  { %1258 = vst [vmem:[#allocation5 + $0x38] sm:$0xff] %v1128_v31 }
 0x3a8   :  { %1257 = vst [vmem:[#allocation5 + $0x30] sm:$0xff] %v1123_v33  ;;  %v1793_v34 = vpop.f32.mrb[34].mxu1 }
 0x3a9   :  { %v1138_v35 = vadd.f32 %v1793_v34, %v2617_v47  ;;  %v1132_v36 = vpop.f32.mrb[35].mxu1 }
 0x3aa   :  { %v1133_v37 = vadd.f32 %v2617_v47, %v1132_v36 }
 0x3ab   :  { %1260 = vst [vmem:[#allocation5 + $0x48] sm:$0xff] %v1138_v35 }
 0x3ac   :  { %1259 = vst [vmem:[#allocation5 + $0x40] sm:$0xff] %v1133_v37  ;;  %v1796_v38 = vpop.f32.mrb[36].mxu1 }
 0x3ad   :  { %v1148_v39 = vadd.f32 %v1796_v38, %v2617_v47  ;;  %v1142_v40 = vpop.f32.mrb[37].mxu1 }
 0x3ae   :  { %v1143_v4 = vadd.f32 %v2617_v47, %v1142_v40 }
 0x3af   :  { %1262 = vst [vmem:[#allocation5 + $0x58] sm:$0xff] %v1148_v39 }
 0x3b0   :  { %1261 = vst [vmem:[#allocation5 + $0x50] sm:$0xff] %v1143_v4  ;;  %v1799_v41 = vpop.f32.mrb[38].mxu1 }
 0x3b1   :  { %v1158_v42 = vadd.f32 %v1799_v41, %v2617_v47  ;;  %v1152_v43 = vpop.f32.mrb[39].mxu1 }
 0x3b2   :  { %v1153_v44 = vadd.f32 %v2617_v47, %v1152_v43 }
 0x3b3   :  { %1264 = vst [vmem:[#allocation5 + $0x68] sm:$0xff] %v1158_v42 }
 0x3b4   :  { %1263 = vst [vmem:[#allocation5 + $0x60] sm:$0xff] %v1153_v44  ;;  %v1802_v45 = vpop.f32.mrb[40].mxu1 }
 0x3b5   :  { %v1168_v46 = vadd.f32 %v1802_v45, %v2617_v47  ;;  %v1162_v48 = vpop.f32.mrb[41].mxu1 }
 0x3b6   :  { %v1163_v49 = vadd.f32 %v2617_v47, %v1162_v48 }
 0x3b7   :  { %1266 = vst [vmem:[#allocation5 + $0x78] sm:$0xff] %v1168_v46 }
 0x3b8   :  { %1265 = vst [vmem:[#allocation5 + $0x70] sm:$0xff] %v1163_v49  ;;  %v1805_v50 = vpop.f32.mrb[42].mxu1 }
 0x3b9   :  { %v1178_v17 = vadd.f32 %v1805_v50, %v2617_v47  ;;  %v1172_v51 = vpop.f32.mrb[43].mxu1 }
 0x3ba   :  { %v1173_v52 = vadd.f32 %v2617_v47, %v1172_v51 }
 0x3bb   :  { %1268 = vst [vmem:[#allocation5 + $0x88] sm:$0xff] %v1178_v17 }
 0x3bc   :  { %1267 = vst [vmem:[#allocation5 + $0x80] sm:$0xff] %v1173_v52  ;;  %v1808_v53 = vpop.f32.mrb[44].mxu1 }
 0x3bd   :  { %v1188_v54 = vadd.f32 %v1808_v53, %v2617_v47  ;;  %v1182_v55 = vpop.f32.mrb[45].mxu1 }
 0x3be   :  { %v1183_v56 = vadd.f32 %v2617_v47, %v1182_v55 }
 0x3bf   :  { %1270 = vst [vmem:[#allocation5 + $0x98] sm:$0xff] %v1188_v54 }
 0x3c0   :  { %1269 = vst [vmem:[#allocation5 + $0x90] sm:$0xff] %v1183_v56  ;;  %v1811_v57 = vpop.f32.mrb[46].mxu1 }
 0x3c1   :  { %v1198_v58 = vadd.f32 %v1811_v57, %v2617_v47  ;;  %v1192_v59 = vpop.f32.mrb[47].mxu1 }
 0x3c2   :  { %v1193_v60 = vadd.f32 %v2617_v47, %v1192_v59 }
 0x3c3   :  { %1272 = vst [vmem:[#allocation5 + $0xa8] sm:$0xff] %v1198_v58 }
 0x3c4   :  { %1271 = vst [vmem:[#allocation5 + $0xa0] sm:$0xff] %v1193_v60  ;;  %v1814_v61 = vpop.f32.mrb[48].mxu1 }
 0x3c5   :  { %v1208_v62 = vadd.f32 %v1814_v61, %v2617_v47  ;;  %v1202_v63 = vpop.f32.mrb[49].mxu1 }
 0x3c6   :  { %v1203_v0 = vadd.f32 %v2617_v47, %v1202_v63 }
 0x3c7   :  { %1274 = vst [vmem:[#allocation5 + $0xb8] sm:$0xff] %v1208_v62 }
 0x3c8   :  { %1273 = vst [vmem:[#allocation5 + $0xb0] sm:$0xff] %v1203_v0  ;;  %v1817_v1 = vpop.f32.mrb[50].mxu1 }
 0x3c9   :  { %v1218_v2 = vadd.f32 %v1817_v1, %v2617_v47  ;;  %v1212_v3 = vpop.f32.mrb[51].mxu1 }
 0x3ca   :  { %v1213_v5 = vadd.f32 %v2617_v47, %v1212_v3 }
 0x3cb   :  { %1276 = vst [vmem:[#allocation5 + $0xc8] sm:$0xff] %v1218_v2 }
 0x3cc   :  { %1275 = vst [vmem:[#allocation5 + $0xc0] sm:$0xff] %v1213_v5  ;;  %v1820_v6 = vpop.f32.mrb[52].mxu1 }
 0x3cd   :  { %v1228_v7 = vadd.f32 %v1820_v6, %v2617_v47  ;;  %v1222_v8 = vpop.f32.mrb[53].mxu1 }
 0x3ce   :  { %v1223_v9 = vadd.f32 %v2617_v47, %v1222_v8 }
 0x3cf   :  { %1278 = vst [vmem:[#allocation5 + $0xd8] sm:$0xff] %v1228_v7 }
 0x3d0   :  { %1277 = vst [vmem:[#allocation5 + $0xd0] sm:$0xff] %v1223_v9  ;;  %v1823_v10 = vpop.f32.mrb[54].mxu1 }
 0x3d1   :  { %v1238_v11 = vadd.f32 %v1823_v10, %v2617_v47  ;;  %v1232_v12 = vpop.f32.mrb[55].mxu1 }
 0x3d2   :  { %v1233_v13 = vadd.f32 %v2617_v47, %v1232_v12 }
 0x3d3   :  { %1280 = vst [vmem:[#allocation5 + $0xe8] sm:$0xff] %v1238_v11 }
 0x3d4   :  { %1279 = vst [vmem:[#allocation5 + $0xe0] sm:$0xff] %v1233_v13  ;;  %v1826_v14 = vpop.f32.mrb[56].mxu1 }
 0x3d5   :  { %v1248_v15 = vadd.f32 %v1826_v14, %v2617_v47  ;;  %v1242_v16 = vpop.f32.mrb[57].mxu1 }
 0x3d6   :  { %v1243_v18 = vadd.f32 %v2617_v47, %v1242_v16 }
 0x3d7   :  { %1282 = vst [vmem:[#allocation5 + $0xf8] sm:$0xff] %v1248_v15 }
 0x3d8   :  { %1281 = vst [vmem:[#allocation5 + $0xf0] sm:$0xff] %v1243_v18 }
 0x3d9   :  { %2172 = shalt.err (!%p2169_p12)
}
 0x3da   :  { %s2173_s17 = scalar_lea.hbm %s2673_s7, 4096 }
 0x3db   :  { %p2174_p13 = scmp.ne.s32.totalorder %s2673_s7, %s2173_s17  ;;  %p2177_p0 = scmp.lt.u32.totalorder %s2173_s17, %s2673_s7 }
 0x3dd   :  { %p2179_p1 = pnand %p2177_p0, %p2174_p13 }
 0x3df   :  { %2182 = shalt.err (!%p2179_p1)
}
 0x3e0   :  { %1294 = dma.vmem_to_hbm [thread:$0]  %s1289_s14, 4096, %s2673_s7, [#allocation4], %s2188_s11, %s2188_s11, %s2189_s12  }
 0x3e1   :  { %2185 = dma.done.wait [#allocation4], 4096  }
 0x3e2   :  { %2186 = vsyncadd [#allocation4], 4294963200 }
 0x3e3   :  { %1298 = vsyncpa [#allocation3], 1 }
 0x3e4   :  { %1299 = vsyncpa [#allocation4], 1 }

</bundles_post_ra>
